<compile_context>
chip_gen: v7x
topology: tpu7x:2x2x1
jax: 0.10.0
libtpu: 0.0.40
codegen_flags: <defaults>
</compile_context>

<pallas_src>
import jax
import jax.numpy as jnp
from jax.experimental import pallas as pl
from jax.experimental.pallas import tpu as pltpu
import numpy as np


def _make_kernel(H_in, W_in, H_out, W_out, cdtype):
    def kernel(x_ref, o_ref):
        CB = x_ref.shape[0]
        xv = x_ref[...].astype(cdtype)                       # (CB, H_in, W_in)

        # ---- W selector Cm[wi, wo] = 1 iff floor(wo*W_in/W_out) == wi ----
        # floor(a/b) == wi  <=>  wi*b <= a < (wi+1)*b   (no integer division)
        wo = jax.lax.broadcasted_iota(jnp.int32, (W_in, W_out), 1)
        wi = jax.lax.broadcasted_iota(jnp.int32, (W_in, W_out), 0)
        tw = wo * W_in
        cm = jnp.logical_and(wi * W_out <= tw, tw < (wi + 1) * W_out).astype(cdtype)

        # ---- H selector R[ho, hi] = 1 iff floor(ho*H_in/H_out) == hi ----
        ho = jax.lax.broadcasted_iota(jnp.int32, (H_out, H_in), 0)
        hi = jax.lax.broadcasted_iota(jnp.int32, (H_out, H_in), 1)
        th = ho * H_in
        r = jnp.logical_and(hi * H_out <= th, th < (hi + 1) * H_out).astype(cdtype)

        # Stage 1: expand W with a tiny one-hot matmul (exact selection).
        x2 = xv.reshape(CB * H_in, W_in)
        y = jnp.dot(x2, cm, preferred_element_type=jnp.float32).astype(cdtype)
        y3 = y.reshape(CB, H_in, W_out)                      # (CB, H_in, W_out)

        # Stage 2: expand H with a tiny batched matmul (channel = batch dim).
        rb = jnp.broadcast_to(r[None, :, :], (CB, H_out, H_in))
        out = jnp.einsum("coh,chw->cow", rb, y3,
                         preferred_element_type=jnp.float32)  # (CB, H_out, W_out)
        o_ref[...] = out.astype(o_ref.dtype)

    return kernel


def _round_up(n, m):
    return ((n + m - 1) // m) * m


def upsample_nearest(x: jax.Array, target_size) -> jax.Array:
    """x: (N, C, H_in, W_in); target_size: (..., H_out, W_out) (only last two used)."""
    assert x.ndim == 4
    N, C, H_in, W_in = x.shape
    H_out, W_out = int(target_size[-2]), int(target_size[-1])
    NC = N * C

    itemsize = jnp.dtype(x.dtype).itemsize
    if jnp.issubdtype(x.dtype, jnp.floating):
        cdtype = x.dtype
    else:
        cdtype = jnp.float32  # TODO(synk): exact only for |v| < 2^24 integer inputs.
    cbytes = jnp.dtype(cdtype).itemsize

    # ---- VMEM accounting (tile-padded, per channel), double-buffered I/O ----
    in_plane = _round_up(H_in, 8) * _round_up(W_in, 128) * itemsize
    out_plane = _round_up(H_out, 8) * _round_up(W_out, 128) * itemsize
    tmp_plane = (_round_up(H_in, 8) * _round_up(W_out, 128) * max(cbytes, 4)   # y3
                 + _round_up(H_out, 8) * _round_up(H_in, 128) * cbytes          # rb
                 + _round_up(H_out, 8) * _round_up(W_out, 128) * 4)             # f32 acc
    per_channel = 2 * (in_plane + out_plane) + tmp_plane

    vmem_budget = 20 << 20                       # residency target, < 32 MiB scoped
    cb_max = max(1, vmem_budget // per_channel)
    CB = min(NC, cb_max)
    if NC >= 2 and CB >= NC:
        CB = (NC + 1) // 2                       # >= 2 grid steps → v7x megacore
    sub_pack = max(8, 32 // max(1, itemsize))    # 8 f32 / 16 bf16 / 32 int8
    if CB > sub_pack:
        CB = (CB // sub_pack) * sub_pack
    CB = max(1, min(CB, NC))

    x3 = x.reshape(NC, H_in, W_in)               # free reshape (contiguous NCHW)
    grid = (pl.cdiv(NC, CB),)

    cost = pl.CostEstimate(
        flops=2 * NC * (H_in * W_in * W_out + H_in * H_out * W_out),
        transcendentals=0,
        bytes_accessed=NC * (H_in * W_in + H_out * W_out) * itemsize,
    )

    out3 = pl.pallas_call(
        _make_kernel(H_in, W_in, H_out, W_out, cdtype),
        out_shape=jax.ShapeDtypeStruct((NC, H_out, W_out), x.dtype),
        grid=grid,
        in_specs=[pl.BlockSpec((CB, H_in, W_in), lambda i: (i, 0, 0))],
        out_specs=pl.BlockSpec((CB, H_out, W_out), lambda i: (i, 0, 0)),
        compiler_params=pltpu.CompilerParams(
            dimension_semantics=("parallel",),
            vmem_limit_bytes=32 * 1024 * 1024,
        ),
        cost_estimate=cost,
    )(x3)

    return out3.reshape(N, C, H_out, W_out)


def _ref_upsample(x, H_out, W_out):
    _, _, H_in, W_in = x.shape
    ri = (jnp.arange(H_out) * H_in) // H_out
    ci = (jnp.arange(W_out) * W_in) // W_out
    return x[:, :, ri, :][:, :, :, ci]


if __name__ == "__main__":
    key = jax.random.PRNGKey(0)

    # Case 1: integer 2x upsample (the common case).
    N, C, H_in, W_in = 2, 4, 16, 16
    H_out, W_out = 32, 32
    x = jax.random.normal(key, (N, C, H_in, W_in), dtype=jnp.float32)
    out = jax.block_until_ready(upsample_nearest(x, (N, C, H_out, W_out)))
    ref = _ref_upsample(x, H_out, W_out)
    assert out.shape == (N, C, H_out, W_out), out.shape
    assert out.dtype == x.dtype
    np.testing.assert_allclose(np.asarray(out), np.asarray(ref), rtol=0, atol=0)

    # Case 2: non-integer ratio (general nearest mapping).
    H_out2, W_out2 = 25, 19
    out2 = jax.block_until_ready(upsample_nearest(x, (N, C, H_out2, W_out2)))
    ref2 = _ref_upsample(x, H_out2, W_out2)
    assert out2.shape == (N, C, H_out2, W_out2), out2.shape
    np.testing.assert_allclose(np.asarray(out2), np.asarray(ref2), rtol=0, atol=0)

    print("KERNEL_OK")
</pallas_src>

<mosaic_0001>
module attributes {stable_mosaic.version = 11 : i64} {
  func.func @kernel(%arg0: i32, %arg1: memref<4x16x16xf32, #tpu.memory_space<vmem>>, %arg2: memref<4x32x32xf32, #tpu.memory_space<vmem>>) attributes {dimension_semantics = [#tpu.dimension_semantics<parallel>], iteration_bounds = array<i64: 2>, scalar_prefetch = 0 : i64, scratch_operands = 0 : i64, tpu.core_type = #tpu.core_type<tc>, window_params = [{transform_indices = @transform_0, window_bounds = array<i64: 4, 16, 16>}, {transform_indices = @transform_1, window_bounds = array<i64: 4, 32, 32>}]} {
    %c0 = arith.constant 0 : index
    %c0_0 = arith.constant 0 : index
    %c0_1 = arith.constant 0 : index
    %0 = vector.load %arg1[%c0, %c0_0, %c0_1] : memref<4x16x16xf32, #tpu.memory_space<vmem>>, vector<4x16x16xf32>
    %1 = tpu.iota {dimensions = array<i32: 1>} : vector<16x32xi32>
    %2 = tpu.iota {dimensions = array<i32: 0>} : vector<16x32xi32>
    %c16_i32 = arith.constant 16 : i32
    %3 = vector.broadcast %c16_i32 : i32 to vector<16x32xi32>
    %4 = arith.muli %1, %3 : vector<16x32xi32>
    %c32_i32 = arith.constant 32 : i32
    %5 = vector.broadcast %c32_i32 : i32 to vector<16x32xi32>
    %6 = arith.muli %2, %5 : vector<16x32xi32>
    %7 = arith.cmpi sle, %6, %4 : vector<16x32xi32>
    %c1_i32 = arith.constant 1 : i32
    %8 = vector.broadcast %c1_i32 : i32 to vector<16x32xi32>
    %9 = arith.addi %2, %8 : vector<16x32xi32>
    %c32_i32_2 = arith.constant 32 : i32
    %10 = vector.broadcast %c32_i32_2 : i32 to vector<16x32xi32>
    %11 = arith.muli %9, %10 : vector<16x32xi32>
    %12 = arith.cmpi slt, %4, %11 : vector<16x32xi32>
    %13 = arith.andi %7, %12 : vector<16x32xi1>
    %14 = arith.extui %13 : vector<16x32xi1> to vector<16x32xi32>
    %15 = arith.sitofp %14 : vector<16x32xi32> to vector<16x32xf32>
    %16 = tpu.iota {dimensions = array<i32: 0>} : vector<32x16xi32>
    %17 = tpu.iota {dimensions = array<i32: 1>} : vector<32x16xi32>
    %c16_i32_3 = arith.constant 16 : i32
    %18 = vector.broadcast %c16_i32_3 : i32 to vector<32x16xi32>
    %19 = arith.muli %16, %18 : vector<32x16xi32>
    %c32_i32_4 = arith.constant 32 : i32
    %20 = vector.broadcast %c32_i32_4 : i32 to vector<32x16xi32>
    %21 = arith.muli %17, %20 : vector<32x16xi32>
    %22 = arith.cmpi sle, %21, %19 : vector<32x16xi32>
    %c1_i32_5 = arith.constant 1 : i32
    %23 = vector.broadcast %c1_i32_5 : i32 to vector<32x16xi32>
    %24 = arith.addi %17, %23 : vector<32x16xi32>
    %c32_i32_6 = arith.constant 32 : i32
    %25 = vector.broadcast %c32_i32_6 : i32 to vector<32x16xi32>
    %26 = arith.muli %24, %25 : vector<32x16xi32>
    %27 = arith.cmpi slt, %19, %26 : vector<32x16xi32>
    %28 = arith.andi %22, %27 : vector<32x16xi1>
    %29 = arith.extui %28 : vector<32x16xi1> to vector<32x16xi32>
    %30 = arith.sitofp %29 : vector<32x16xi32> to vector<32x16xf32>
    %31 = vector.shape_cast %0 : vector<4x16x16xf32> to vector<64x16xf32>
    %cst = arith.constant dense<0.000000e+00> : vector<64x32xf32>
    %32 = tpu.matmul %31, %15, %cst {dimension_numbers = #tpu.dot_dimension_numbers<[1], [0], [0], [1], [0, 0, 1, 1], [], []>} : vector<64x16xf32>, vector<16x32xf32>, vector<64x32xf32> -> vector<64x32xf32>
    %33 = vector.shape_cast %32 : vector<64x32xf32> to vector<4x16x32xf32>
    %34 = vector.shape_cast %30 : vector<32x16xf32> to vector<1x32x16xf32>
    %35 = vector.shape_cast %34 : vector<1x32x16xf32> to vector<1x32x16xf32>
    %36 = vector.broadcast %35 : vector<1x32x16xf32> to vector<4x32x16xf32>
    "tpu.trace_start"() <{level = 10 : i32, message = "coh,chw->cow"}> : () -> ()
    %cst_7 = arith.constant dense<0.000000e+00> : vector<4x32x32xf32>
    %37 = tpu.matmul %36, %33, %cst_7 {dimension_numbers = #tpu.dot_dimension_numbers<[2], [1], [1], [2], [0, 0, 0, 1, 1, 2], [0], [0]>} : vector<4x32x16xf32>, vector<4x16x32xf32>, vector<4x32x32xf32> -> vector<4x32x32xf32>
    "tpu.trace_stop"() : () -> ()
    %c0_8 = arith.constant 0 : index
    %c0_9 = arith.constant 0 : index
    %c0_10 = arith.constant 0 : index
    %38 = vector.load %arg2[%c0_8, %c0_9, %c0_10] : memref<4x32x32xf32, #tpu.memory_space<vmem>>, vector<4x32x32xf32>
    tpu.vector_store %arg2[%c0_8, %c0_9, %c0_10], %37 {strides = array<i32>} : memref<4x32x32xf32, #tpu.memory_space<vmem>>, vector<4x32x32xf32>,
    return
  }
  func.func @transform_0(%arg0: i32) -> (i32, i32, i32) {
    %c0_i32 = arith.constant 0 : i32
    %c0_i32_0 = arith.constant 0 : i32
    %c0_i32_1 = arith.constant 0 : i32
    return %arg0, %c0_i32, %c0_i32_0 : i32, i32, i32
  }
  func.func @transform_1(%arg0: i32) -> (i32, i32, i32) {
    %c0_i32 = arith.constant 0 : i32
    %c0_i32_0 = arith.constant 0 : i32
    %c0_i32_1 = arith.constant 0 : i32
    return %arg0, %c0_i32, %c0_i32_0 : i32, i32, i32
  }
}

</mosaic_0001>

<bundles_post_ra>
// kernel: tpu_custom_call.1
= control target key start
LH: loop header
LB: loop body
LE: loop exit
PB: predicated region body
PF: predicated region fallthrough
CT: control target
= control target key end

     0   :  { %6 = vsyncpa [#allocation3], 0  ;;  %s1346_s0 = inlined_call_operand.hbm [shape: f32[8,16,16], index: 0, kind: input, shape index: {}]   ;;  %s1347_s1 = inlined_call_operand.hbm [shape: f32[8,32,32], index: 1, kind: output, shape index: {}]  }
   0x1   :  { %8 = vsyncpa [#allocation3 + $0x1], 0 }
   0x2   :  { %9 = vsyncpa [#allocation4], 0 }
   0x3   :  { %11 = vsyncpa [#allocation4 + $0x1], 0  ;;  %s1114_s6 = smov 0   ;;  %s1116_s7 = smov 0  }
   0x4   :  { %s1118_s8 = smov 0   ;;  %s1120_s9 = smov 0  }
   0x5 LB: > { %s1135_s10 = sadd.s32 4294967295, %s1094_s9   ;;  %s784_s11 = sadd.s32 4294967294, %s1094_s9   ;;  %s1094_s9 = sphi %s1120_s9, %s1360_s9   ;;  %s1090_s8 = sphi %s1118_s8, %s1359_s8   ;;  %s1086_s7 = sphi %s1116_s7, %s1358_s7   ;;  %s1082_s6 = sphi %s1114_s6, %s1357_s6  }
   0x6   : > { %s1139_s12 = sadd.s32 1, %s1094_s9   ;;  %s24_s13 = sadd.s32 1, %s1090_s8 }
   0x7   : > { %s21_s14 = ssub.s32 %s1094_s9, %s1139_s12  ;;  %p31_p0 = scmp.ne.s32.totalorder %s1090_s8, %s1086_s7 }
   0x8   : > { %p22_p1 = scmp.eq.s32.totalorder %s21_s14, 0  ;;  %p32_p2 = scmp.eq.s32.totalorder %s1094_s9, 0 }
   0x9   : > { %p37_p3 = scmp.ne.s32.totalorder %s1086_s7, %s1082_s6  ;;  %p38_p4 = scmp.eq.s32.totalorder %s1135_s10, 0 }
   0xa   : > { %s1151_s15 = scalar_select %p22_p1, %s1090_s8, %s24_s13  }
   0xb   : > { %p1153_p5 = por %p32_p2, %p31_p0  ;;  %p1157_p6 = por %p38_p4, %p37_p3 }
   0xc   : > { %p61_p7 = scmp.eq.s32.totalorder %s1135_s10, 1  ;;  %p67_p8 = scmp.eq.s32.totalorder %s784_s11, 1 }
   0xd   : > { %p958_p10 = scmp.lt.s32.totalorder %s1094_s9, 2  ;;  %s87_s20 = sand.u32 1, %s1090_s8  }
   0xe   : > { %p1164_p11 = por %p61_p7, %p31_p0  ;;  %p1168_p12 = por %p67_p8, %p37_p3 }
   0xf   : > { %s833_s21 = sshll.u32 %s1094_s9, 10  ;;  %s787_s22 = sshll.u32 %s87_s20, 6 }
  0x10   : > { %s1351_s18 = scalar_select %p1164_p11, 1, 0 }
  0x11   : > { %s1352_s19 = scalar_select %p1168_p12, 1, 0 }
  0x12   : > { %s1177_s25 = scalar_lea.hbm %s1346_s0, %s833_s21  ;;  %s91_s26 = scalar_lea.vmem [#allocation2], %s787_s22 }
  0x13   : > { %s99_s27 = sshll.u32 %s91_s26, 4  ;;  %p1181_p13 = pnand %p958_p10, %p1153_p5  ;;  %s1185_s27 = int_to_ptr.vmem [resolvable:$true] %s99_s27 }
  0x14   : > { %s1187_s29 = scalar_lea.sflag [#allocation3], %s87_s20  ;;  %s998_s30 = scalar_lea.hbm %s1177_s25, 1024 }
  0x15   : > { %p999_p0 = scmp.ne.s32.totalorder %s1177_s25, %s998_s30  ;;  %p1000_p1 = pneg %p1181_p13 }
  0x16   : > { %s1003_s4 = scalar_lea.hbm %s1346_s0, 2048  ;;  %p1004_p4 = scmp.lt.u32.totalorder %s1177_s25, %s1346_s0 }
  0x17   : > { %p1001_p2 = pnand %p1000_p1, %p999_p0  ;;  %p1005_p5 = scmp.lt.u32.totalorder %s1003_s4, %s998_s30 }
  0x18   : > { %p1007_p8 = scmp.lt.u32.totalorder %s998_s30, %s1177_s25 }
  0x19   : > { %p1002_p3 = pneg %p1001_p2  ;;  %p1006_p7 = por %p1005_p5, %p1004_p4 }
  0x1b   : > { %p1008_p10 = por %p1007_p8, %p1006_p7 }
  0x1d   : > { %p1009_p9 = pnand %p1008_p10, %p1002_p3 }
  0x1f   : > { %1012 = shalt.err (!%p1009_p9)
}
  0x20   : > { %s1013_s13 = scalar_lea.vmem %s1185_s27, 1024  ;;  %s1096_s14 = smov [#allocation2]  }
  0x21   : > { %p1014_p0 = scmp.ne.s32.totalorder %s1185_s27, %s1013_s13  ;;  %s1018_s16 = sshll.u32 %s1096_s14, 4  ;;  %s1019_s16 = int_to_ptr.vmem [resolvable:$false] %s1018_s16 }
  0x22   : > { %s1020_s20 = scalar_lea.vmem %s1019_s16, 2048  ;;  %p1021_p11 = scmp.lt.s32.totalorder %s1185_s27, %s1019_s16 }
  0x23   : > { %p1016_p2 = pnand %p1014_p0, %p1000_p1  ;;  %p1022_p4 = scmp.lt.s32.totalorder %s1020_s20, %s1013_s13 }
  0x25   : > { %p1017_p12 = pneg %p1016_p2  ;;  %p1023_p5 = por %p1022_p4, %p1021_p11 }
  0x27   : > { %p1024_p7 = pnand %p1023_p5, %p1017_p12 }
  0x29   : > { %1027 = shalt.err (!%p1024_p7)
}
  0x2a   : > { %s1097_s21 = smov 128   ;;  %s1098_s22 = smov 8  }
  0x2b   : > { %953 = dma.hbm_to_vmem [thread:$0]  (!%p1181_p13), %s1177_s25, 1024, %s1185_s27, %s1187_s29, %s1097_s21, %s1097_s21, %s1098_s22  }
  0x2c   : > { %p791_p9 = scmp.ge.s32.totalorder %s1094_s9, 1  ;;  %p107_p1 = scmp.lt.s32.totalorder %s1094_s9, 3 }
  0x2e   : > { %p108_p3 = pnand %p791_p9, %p107_p1 }
  0x2f   : > { %s1218_s23 = sand.u32 (!%p108_p3), 1, %s1086_s7  }
  0x30   : > { %111 = sbr.rel (%p108_p3) target bundleno = 540 (0x21c), region = 24  ;;  %s792_s24 = sshll.u32 (!%p108_p3), %s1218_s23, 6 }
  0x31   : > { %s114_s26 = scalar_lea.sflag (!%p108_p3), [#allocation3], %s1218_s23  ;;  %s1222_s30 = scalar_lea.vmem (!%p108_p3), [#allocation2], %s792_s24 }
  0x37   : > { %1073 = dma.done.wait (%p1157_p6), %s114_s26, 1024  }
  0x38   : > { %1075 = vsyncadd (%p1157_p6), %s114_s26, 4294966272  ;;  %v146_v0 = vlaneseq  ;;  %vm197_vm0 = vcmask 130048   ;;  %v138_v10 = vld [vmem:[%s1222_s30] sm:$0xff]  ;;  %v1099_v12 = vmov 1.0|1.0   ;;  %v139_v13 = vld [vmem:[%s1222_s30 + $0x8] sm:$0xff] }
  0x39   : > { %874 = vmatprep.mubr.msk.f32.mxu0 %vm197_vm0, %v138_v10  ;;  %v140_v14 = vld [vmem:[%s1222_s30 + $0x10] sm:$0xff]  ;;  %v141_v15 = vld [vmem:[%s1222_s30 + $0x18] sm:$0xff]  ;;  %v142_v16 = vld [vmem:[%s1222_s30 + $0x20] sm:$0xff]  ;;  %v1100_v28 = vmov 0.0   ;;  %s793_s17 = sshll.u32 %s1218_s23, 7  ;;  %s835_s27 = sshll.u32 %s1135_s10, 11 }
  0x3a   : > { %v147_v1 = vand.u32 127, %v146_v0  ;;  %v149_v2 = vshrl.u32 %v146_v0, 7  ;;  %v143_v17 = vld [vmem:[%s1222_s30 + $0x28] sm:$0xff]  ;;  %v144_v18 = vld [vmem:[%s1222_s30 + $0x30] sm:$0xff]  ;;  %v145_v19 = vld [vmem:[%s1222_s30 + $0x38] sm:$0xff]  ;;  %s1261_s25 = scalar_lea.vmem [#allocation5], %s793_s17  ;;  %s1296_s3 = scalar_lea.hbm %s1347_s1, %s835_s27 }
  0x3b   : > { %s711_s28 = sshll.u32 %s1261_s25, 4  ;;  %s697_s10 = scalar_lea.sflag [#allocation4], %s1218_s23  ;;  %s1298_s28 = int_to_ptr.vmem [resolvable:$true] %s711_s28 }
  0x3c   : > { %v150_v3 = vadd.s32 8, %v149_v2  ;;  %v151_v4 = vmul.u32 16, %v147_v1  ;;  %v152_v5 = vmul.u32 32, %v149_v2  ;;  %v156_v6 = vadd.s32 1, %v149_v2  ;;  %s1028_s4 = scalar_lea.vmem %s1298_s28, 2048  ;;  %p1354_p11 = scmp.ne.s32.totalorder %s1351_s18, 0 }
  0x3d   : > { %v179_v20 = vadd.s32 1, %v147_v1  ;;  %v170_v21 = vmul.u32 16, %v149_v2  ;;  %v174_v22 = vmul.u32 32, %v147_v1  ;;  %v168_v25 = vadd.s32 16, %v149_v2  ;;  %p1029_p6 = scmp.ne.s32.totalorder %s1298_s28, %s1028_s4  ;;  %s1101_s5 = smov [#allocation5]  }
  0x3e   : > { %v153_v7 = vmul.u32 32, %v150_v3  ;;  %vm154_vm1 = vcmp.le.s32.totalorder %v152_v5, %v151_v4  ;;  %v157_v8 = vadd.s32 1, %v150_v3  ;;  %v158_v9 = vmul.u32 32, %v156_v6  ;;  %s1032_s11 = sshll.u32 %s1101_s5, 4  ;;  %s1033_s11 = int_to_ptr.vmem [resolvable:$false] %s1032_s11 }
  0x3f   : > { %v180_v23 = vmul.u32 32, %v179_v20  ;;  %v171_v24 = vmul.u32 16, %v150_v3  ;;  %vm175_vm8 = vcmp.le.s32.totalorder %v174_v22, %v170_v21  ;;  %v169_v27 = vadd.s32 24, %v149_v2  ;;  %p1030_p12 = pnand %p1029_p6, %p1354_p11  ;;  %s1034_s13 = scalar_lea.vmem %s1033_s11, 4096 }
  0x40   : > { %vm155_vm2 = vcmp.le.s32.totalorder %v153_v7, %v151_v4  ;;  %v159_v11 = vmul.u32 32, %v157_v8  ;;  %vm160_vm3 = vcmp.lt.s32.totalorder %v151_v4, %v158_v9  ;;  %v172_v26 = vmul.u32 16, %v168_v25  ;;  %p1035_p8 = scmp.lt.s32.totalorder %s1298_s28, %s1033_s11  ;;  %p1036_p10 = scmp.lt.s32.totalorder %s1034_s13, %s1028_s4 }
  0x41   : > { %vm162_vm4 = vmand %vm154_vm1, %vm160_vm3  ;;  %vm181_vm9 = vcmp.lt.s32.totalorder %v170_v21, %v180_v23  ;;  %vm176_vm10 = vcmp.le.s32.totalorder %v174_v22, %v171_v24  ;;  %vm182_vm11 = vcmp.lt.s32.totalorder %v171_v24, %v180_v23  ;;  %v173_v31 = vmul.u32 16, %v169_v27  ;;  %p1031_p13 = pneg %p1030_p12 }
  0x42   : > { %vm161_vm5 = vcmp.lt.s32.totalorder %v151_v4, %v159_v11  ;;  %vm185_vm12 = vmand %vm175_vm8, %vm181_vm9  ;;  %vm177_vm14 = vcmp.le.s32.totalorder %v174_v22, %v172_v26  ;;  %vm183_vm15 = vcmp.lt.s32.totalorder %v172_v26, %v180_v23  ;;  %p1037_p0 = por %p1036_p10, %p1035_p8 }
  0x43   : > { %vm163_vm6 = vmand %vm155_vm2, %vm161_vm5  ;;  %v796_v29 = vsel %vm185_vm12, 1.0, %v1100_v28  ;;  %vm178_vm2 = vcmp.le.s32.totalorder %v174_v22, %v173_v31  ;;  %vm184_vm3 = vcmp.lt.s32.totalorder %v173_v31, %v180_v23  ;;  %vm679_vm5 = vcmask 261120  }
  0x44   : > { %vm926_vm7 = vmpackc.low %vm163_vm6, %vm162_vm4  ;;  %890 = vmatprep.mubr.msk.f32.mxu1 %vm197_vm0, %v796_v29  ;;  %p1038_p2 = pnand %p1037_p0, %p1031_p13 }
  0x45   : > { %927 = vmatprep.subr.msk.bf16.mxu0 %vm926_vm7, %v1099_v12  ;;  %vm186_vm13 = vmand %vm176_vm10, %vm182_vm11 }
  0x46   : > { %929 = vmatpush3.bf16.msk.msra.mxu0 %vm926_vm7, %v1099_v12  ;;  %v797_v30 = vsel %vm186_vm13, 1.0, %v1100_v28  ;;  %vm187_vm1 = vmand %vm177_vm14, %vm183_vm15 }
  0x47   : > { %v798_v32 = vsel %vm187_vm1, 1.0, %v1100_v28  ;;  %vm188_vm4 = vmand %vm178_vm2, %vm184_vm3 }
  0x48   : > { %v799_v33 = vsel %vm188_vm4, 1.0, %v1100_v28 }
  0x49   : > { %875 = vmatmul.mubr.msk.f32.vlgmr.msra.gmra.mrb[0].mxu0 %vm197_vm0, %v139_v13 }
  0x4a   : > { %877 = vmatprep.mubr.msk.f32.mxu0 %vm197_vm0, %v140_v14 }
  0x4d   : > { %878 = vmatmul.mubr.msk.f32.gmra.mrb[2].mxu0 %vm197_vm0, %v141_v15 }
  0x4e   : > { %880 = vmatprep.mubr.msk.f32.mxu0 %vm197_vm0, %v142_v16 }
  0x51   : > { %881 = vmatmul.mubr.msk.f32.gmra.mrb[4].mxu0 %vm197_vm0, %v143_v17 }
  0x52   : > { %883 = vmatprep.mubr.msk.f32.mxu0 %vm197_vm0, %v144_v18 }
  0x55   : > { %884 = vmatmul.mubr.msk.f32.gmra.mrb[6].mxu0 %vm197_vm0, %v145_v19 }
  0x56   : > { %910 = vmatprep.mubr.msk.f32.mxu0 %vm197_vm0, %v796_v29 }
 0x11c   : > { %v876_v34 = vpop.f32.mrb[0].mxu0 }
 0x11d   : > { %v288_v35 = vpop.f32.mrb[1].mxu0 }
 0x11e   : > { %v930_v36 = vpack.c.bf16 %v876_v34, %v288_v35 }
 0x120   : > { %v879_v37 = vpop.f32.mrb[2].mxu0  ;;  %931 = vmatprep.subr.bf16.mxu1 %v930_v36 }
 0x121   : > { %v298_v38 = vpop.f32.mrb[3].mxu0  ;;  %933 = vmatpush3.bf16.msra.mxu1 %v930_v36 }
 0x122   : > { %v934_v39 = vpack.c.bf16 %v879_v37, %v298_v38 }
 0x124   : > { %v882_v40 = vpop.f32.mrb[4].mxu0  ;;  %935 = vmatprep.subr.bf16.mxu1 %v934_v39  ;;  %891 = vmatmul.mubr.msk.f32.vlgmr.msra.gmra.mrb[0].mxu1 %vm197_vm0, %v797_v30 }
 0x125   : > { %v308_v41 = vpop.f32.mrb[5].mxu0  ;;  %937 = vmatpush3.bf16.msra.mxu1 %v934_v39  ;;  %893 = vmatprep.mubr.msk.f32.mxu1 %vm197_vm0, %v798_v32 }
 0x126   : > { %v938_v42 = vpack.c.bf16 %v882_v40, %v308_v41 }
 0x128   : > { %939 = vmatprep.subr.bf16.mxu0 %v938_v42  ;;  %v885_v43 = vpop.f32.mrb[6].mxu0  ;;  %894 = vmatmul.mubr.msk.f32.gmra.mrb[2].mxu1 %vm197_vm0, %v799_v33 }
 0x129   : > { %941 = vmatpush3.bf16.msra.mxu0 %v938_v42  ;;  %v318_v44 = vpop.f32.mrb[7].mxu0  ;;  %900 = vmatprep.mubr.msk.f32.mxu1 %vm197_vm0, %v796_v29 }
 0x12a   : > { %v942_v45 = vpack.c.bf16 %v885_v43, %v318_v44 }
 0x12c   : > { %943 = vmatprep.subr.bf16.mxu1 %v942_v45  ;;  %901 = vmatmul.mubr.msk.f32.vlgmr.msra.gmra.mrb[4].mxu1 %vm197_vm0, %v797_v30 }
 0x12d   : > { %945 = vmatpush3.bf16.msra.mxu1 %v942_v45  ;;  %903 = vmatprep.mubr.msk.f32.mxu1 %vm197_vm0, %v798_v32 }
 0x12e   : > { %911 = vmatmul.mubr.msk.f32.vlgmr.msra.gmra.mrb[8].mxu0 %vm197_vm0, %v797_v30 }
 0x12f   : > { %913 = vmatprep.mubr.msk.f32.mxu0 %vm197_vm0, %v798_v32 }
 0x130   : > { %904 = vmatmul.mubr.msk.f32.gmra.mrb[6].mxu1 %vm197_vm0, %v799_v33 }
 0x131   : > { %920 = vmatprep.mubr.msk.f32.mxu1 %vm197_vm0, %v796_v29 }
 0x132   : > { %914 = vmatmul.mubr.msk.f32.gmra.mrb[10].mxu0 %vm197_vm0, %v799_v33 }
 0x134   : > { %921 = vmatmul.mubr.msk.f32.vlgmr.msra.gmra.mrb[8].mxu1 %vm197_vm0, %v797_v30 }
 0x135   : > { %923 = vmatprep.mubr.msk.f32.mxu1 %vm197_vm0, %v798_v32 }
 0x138   : > { %924 = vmatmul.mubr.msk.f32.gmra.mrb[10].mxu1 %vm197_vm0, %v799_v33 }
 0x1f7   : > { %v892_v46 = vpop.f32.mrb[0].mxu1 }
 0x1f8   : > { %681 = vst.msk [vmem:[%s1261_s25 + $0x8] sm:$0xff] %vm679_vm5, %v892_v46  ;;  %v405_v47 = vpop.f32.mrb[1].mxu1 }
 0x1f9   : > { %680 = vst.msk [vmem:[%s1261_s25] sm:$0xff] %vm679_vm5, %v405_v47 }
 0x1fb   : > { %v895_v48 = vpop.f32.mrb[2].mxu1 }
 0x1fc   : > { %683 = vst.msk [vmem:[%s1261_s25 + $0x18] sm:$0xff] %vm679_vm5, %v895_v48  ;;  %v415_v49 = vpop.f32.mrb[3].mxu1 }
 0x1fd   : > { %682 = vst.msk [vmem:[%s1261_s25 + $0x10] sm:$0xff] %vm679_vm5, %v415_v49 }
 0x1ff   : > { %v902_v50 = vpop.f32.mrb[4].mxu1 }
 0x200   : > { %685 = vst.msk [vmem:[%s1261_s25 + $0x28] sm:$0xff] %vm679_vm5, %v902_v50  ;;  %v490_v51 = vpop.f32.mrb[5].mxu1 }
 0x201   : > { %684 = vst.msk [vmem:[%s1261_s25 + $0x20] sm:$0xff] %vm679_vm5, %v490_v51  ;;  %v912_v52 = vpop.f32.mrb[8].mxu0 }
 0x202   : > { %689 = vst.msk [vmem:[%s1261_s25 + $0x48] sm:$0xff] %vm679_vm5, %v912_v52  ;;  %v575_v53 = vpop.f32.mrb[9].mxu0 }
 0x203   : > { %v905_v54 = vpop.f32.mrb[6].mxu1  ;;  %688 = vst.msk [vmem:[%s1261_s25 + $0x40] sm:$0xff] %vm679_vm5, %v575_v53 }
 0x204   : > { %687 = vst.msk [vmem:[%s1261_s25 + $0x38] sm:$0xff] %vm679_vm5, %v905_v54  ;;  %v500_v55 = vpop.f32.mrb[7].mxu1 }
 0x205   : > { %686 = vst.msk [vmem:[%s1261_s25 + $0x30] sm:$0xff] %vm679_vm5, %v500_v55  ;;  %v915_v56 = vpop.f32.mrb[10].mxu0 }
 0x206   : > { %691 = vst.msk [vmem:[%s1261_s25 + $0x58] sm:$0xff] %vm679_vm5, %v915_v56  ;;  %v585_v57 = vpop.f32.mrb[11].mxu0 }
 0x207   : > { %v922_v58 = vpop.f32.mrb[8].mxu1  ;;  %690 = vst.msk [vmem:[%s1261_s25 + $0x50] sm:$0xff] %vm679_vm5, %v585_v57 }
 0x208   : > { %693 = vst.msk [vmem:[%s1261_s25 + $0x68] sm:$0xff] %vm679_vm5, %v922_v58  ;;  %v660_v59 = vpop.f32.mrb[9].mxu1 }
 0x209   : > { %692 = vst.msk [vmem:[%s1261_s25 + $0x60] sm:$0xff] %vm679_vm5, %v660_v59 }
 0x20b   : > { %v925_v60 = vpop.f32.mrb[10].mxu1 }
 0x20c   : > { %695 = vst.msk [vmem:[%s1261_s25 + $0x78] sm:$0xff] %vm679_vm5, %v925_v60  ;;  %v670_v61 = vpop.f32.mrb[11].mxu1 }
 0x20d   : > { %694 = vst.msk [vmem:[%s1261_s25 + $0x70] sm:$0xff] %vm679_vm5, %v670_v61 }
 0x20e   : > { %1041 = shalt.err (!%p1038_p2)
}
 0x20f   : > { %s1042_s14 = scalar_lea.hbm %s1296_s3, 2048  ;;  %s1046_s21 = scalar_lea.hbm %s1347_s1, 4096 }
 0x210   : > { %p1043_p4 = scmp.ne.s32.totalorder %s1296_s3, %s1042_s14  ;;  %p1047_p9 = scmp.lt.u32.totalorder %s1296_s3, %s1347_s1 }
 0x211   : > { %p1048_p1 = scmp.lt.u32.totalorder %s1046_s21, %s1042_s14  ;;  %p1050_p6 = scmp.lt.u32.totalorder %s1042_s14, %s1296_s3 }
 0x212   : > { %p1044_p5 = pnand %p1043_p4, %p1354_p11 }
 0x213   : > { %p1049_p3 = por %p1048_p1, %p1047_p9 }
 0x214   : > { %p1045_p7 = pneg %p1044_p5 }
 0x215   : > { %p1051_p12 = por %p1050_p6, %p1049_p3 }
 0x217   : > { %p1052_p13 = pnand %p1051_p12, %p1045_p7 }
 0x219   : > { %1055 = shalt.err (!%p1052_p13)
}
 0x21a   : > { %s1102_s26 = smov 128   ;;  %s1103_s30 = smov 8  }
 0x21b   : > { %948 = dma.vmem_to_hbm [thread:$0]  (%p1354_p11), %s1298_s28, 2048, %s1296_s3, %s697_s10, %s1102_s26, %s1102_s26, %s1103_s30  }
 0x21c PF: > { %s726_s17 = sand.u32 1, %s1082_s6   ;;  %p1355_p8 = scmp.ne.s32.totalorder %s1352_s19, 0 }
 0x21d   : > { %p1356_p10 = scmp.ge.s32.totalorder %s1094_s9, 2  ;;  %s727_s25 = scalar_lea.sflag [#allocation4], %s726_s17 }
 0x21f   : > { %p955_p0 = pnand %p1356_p10, %p1355_p8 }
 0x221   : > { %1077 = dma.done.wait (!%p955_p0), %s727_s25, 2048  }
 0x222   : > { %1079 = vsyncadd (!%p955_p0), %s727_s25, 4294965248  ;;  %p14_p2 = scmp.ge.s32.totalorder %s1139_s12, 4   ;;  %s1357_s6 = smov %s1086_s7 }
 0x223   : > { %s1358_s7 = smov %s1090_s8  ;;  %s1359_s8 = smov %s1151_s15 }
 0x224   : > { %s1360_s9 = smov %s1139_s12  ;;  %16 = sbr.rel (!%p14_p2) target bundleno = 5 (0x5), region = 69 }
 0x22b   :  { %732 = vsyncpa [#allocation3], 1 }
 0x22c   :  { %734 = vsyncpa [#allocation3 + $0x1], 1 }
 0x22d   :  { %735 = vsyncpa [#allocation4], 1 }
 0x22e   :  { %737 = vsyncpa [#allocation4 + $0x1], 1 }

</bundles_post_ra>
